<compile_context>
chip_gen: v6e
topology: v6e:2x2x1
jax: 0.10.0
libtpu: 0.0.40
codegen_flags: <defaults>
</compile_context>

<pallas_src>
import jax
import jax.numpy as jnp
import numpy as np
from jax.experimental import pallas as pl
from jax.experimental.pallas import tpu as pltpu


def _round_up(x, m):
    return -(-x // m) * m


def _vmem_budget_bytes():
    """Usable VMEM budget with ~25% headroom for Mosaic scratch / DMA descriptors."""
    try:
        cap = int(pltpu.get_tpu_info().vmem_capacity_bytes)
        return max(int(cap * 0.75), 16 << 20)
    except Exception:
        return 48 << 20  # v7x-safe fallback (64 MiB physical per TC)


def _make_kernel(tile_k, k_tiles, weight_resident):
    """Grid = (batch, row-tile, k-tile).

    x_ref   : VMEM (1, tile_m, tile_k)            compute dtype  patch-matrix tile
    w_ref   : VMEM (K_pad, hidden_p) resident or
              (tile_k, hidden_p) tiled            compute dtype  projection weight
    add_ref : VMEM (1, 1, hidden_p)               f32            per-batch bias (+ time emb)
    pos_ref : VMEM (1, tile_m, hidden_p)          compute dtype  position-embedding tile
    o_ref   : VMEM (1, tile_m, hidden_p)          f32            output tile (= accumulator)
    """

    def kernel(x_ref, w_ref, add_ref, pos_ref, o_ref):
        k = pl.program_id(2)

        @pl.when(k == 0)
        def _():
            o_ref[...] = jnp.zeros_like(o_ref)

        if weight_resident and k_tiles > 1:
            start = pl.multiple_of(k * tile_k, tile_k)
            w = w_ref[pl.ds(start, tile_k), :]
        else:
            w = w_ref[...]

        # MXU; accumulate directly into the f32 output block (resident across k).
        o_ref[0] = o_ref[0] + jnp.dot(x_ref[0], w, preferred_element_type=jnp.float32)

        @pl.when(k == pl.num_programs(2) - 1)
        def _():
            # Epilogue (VPU, lane-dense since hidden_p % 128 == 0).
            o_ref[0] = (o_ref[0]
                        + add_ref[0].astype(jnp.float32)
                        + pos_ref[0].astype(jnp.float32))

    return kernel


def embeddings3d_pallas(x, time, params, patch_size, *, use_bf16=False):
    """Forward pass of Embeddings3D (non-hybrid). Returns (embeddings, features)."""
    compute_dtype = jnp.bfloat16 if use_bf16 else jnp.float32
    isz_c = jnp.dtype(compute_dtype).itemsize

    x = x.astype(jnp.float32)
    B, C, D, H, W = x.shape
    pd, ph, pw = patch_size
    gd, gh, gw = D // pd, H // ph, W // pw
    n_patches = gd * gh * gw
    K = C * pd * ph * pw
    hidden = params["patch_w"].shape[0]
    hidden_p = _round_up(hidden, 128)  # lane-dense stores

    # --- glue: im2col for the stride==kernel Conv3d (see header note) ----------------
    patches = x.astype(compute_dtype).reshape(B, C, gd, pd, gh, ph, gw, pw)
    patches = patches.transpose(0, 2, 4, 6, 1, 3, 5, 7)      # (B,gd,gh,gw,C,pd,ph,pw)
    patches = patches.reshape(B, n_patches, K)

    # PyTorch Conv3d weight (hidden, C, pd, ph, pw) -> (K, hidden) matmul form.
    w_mat = params["patch_w"].reshape(hidden, K).T.astype(compute_dtype)

    # "-1 not in time" branch (host decision mirroring the data-dependent check
    # in the PyTorch forward; this wrapper therefore needs a concrete `time`).
    use_time = not bool(np.any(np.asarray(time) == -1))
    patch_b = params["patch_b"].astype(jnp.float32).reshape(1, hidden)
    if use_time:
        t = jnp.asarray(time, jnp.float32).reshape(B, 1)
        add_vec = (patch_b
                   + t * params["time_w"].astype(jnp.float32).reshape(1, hidden)
                   + params["time_b"].astype(jnp.float32).reshape(1, hidden))
    else:
        add_vec = jnp.broadcast_to(patch_b, (B, hidden))
    add_vec = add_vec.reshape(B, 1, hidden)

    pos_dtype = compute_dtype
    pos = params["pos_emb"].astype(pos_dtype).reshape(1, n_patches, hidden)

    # --- tiling -----------------------------------------------------------------------
    budget = _vmem_budget_bytes()

    tile_m = min(_round_up(n_patches, 8), 512)
    if B == 1:
        # Keep >= 2 row tiles so both v7x TensorCores get work when B == 1.
        half = _round_up(-(-n_patches // 2), 8)
        if 8 <= half < tile_m:
            tile_m = half
    np_padded = _round_up(n_patches, tile_m)
    m_tiles = np_padded // tile_m

    K128 = _round_up(K, 128)
    candidates = [c for c in (8192, 4096, 2048, 1024, 512, 256, 128) if c <= K128]
    if not candidates:
        candidates = [K128]

    pos_isz = jnp.dtype(pos_dtype).itemsize

    def _need(tk, resident):
        k_pad = _round_up(K, tk)
        w_bytes = 2 * (k_pad if resident else tk) * hidden_p * isz_c   # double-buffered
        x_bytes = 2 * tile_m * tk * isz_c
        misc = (2 * hidden_p * 4                      # add_vec block
                + 2 * tile_m * hidden_p * pos_isz     # pos block
                + 2 * tile_m * hidden_p * 4)          # output block (accumulator)
        return k_pad, w_bytes + x_bytes + misc

    chosen = None
    for resident in (True, False):       # prefer a fully VMEM-resident weight
        for tk in candidates:            # largest k tile first (fewest grid steps)
            k_pad, need = _need(tk, resident)
            if need <= budget:
                chosen = (tk, resident, k_pad, need)
                break
        if chosen is not None:
            break
    if chosen is None:  # pathological shapes: smallest tiles, non-resident weight
        tk = candidates[-1]
        k_pad, need = _need(tk, False)
        chosen = (tk, False, k_pad, need)
    tile_k, weight_resident, K_pad, vmem_needed = chosen
    k_tiles = K_pad // tile_k

    # --- zero padding so every BlockSpec divides exactly (padding rows/cols are sliced off)
    if np_padded != n_patches or K_pad != K:
        patches = jnp.pad(patches, ((0, 0), (0, np_padded - n_patches), (0, K_pad - K)))
    if K_pad != K or hidden_p != hidden:
        w_mat = jnp.pad(w_mat, ((0, K_pad - K), (0, hidden_p - hidden)))
    if hidden_p != hidden:
        add_vec = jnp.pad(add_vec, ((0, 0), (0, 0), (0, hidden_p - hidden)))
    if np_padded != n_patches or hidden_p != hidden:
        pos = jnp.pad(pos, ((0, 0), (0, np_padded - n_patches), (0, hidden_p - hidden)))

    if weight_resident:
        w_spec = pl.BlockSpec((K_pad, hidden_p), lambda b, m, k: (0, 0))   # fetched once
    else:
        w_spec = pl.BlockSpec((tile_k, hidden_p), lambda b, m, k: (k, 0))

    grid_spec = pltpu.PrefetchScalarGridSpec(
        num_scalar_prefetch=0,
        grid=(B, m_tiles, k_tiles),
        in_specs=[
            pl.BlockSpec((1, tile_m, tile_k), lambda b, m, k: (b, m, k)),    # patches
            w_spec,                                                          # weight
            pl.BlockSpec((1, 1, hidden_p), lambda b, m, k: (b, 0, 0)),       # bias+time
            pl.BlockSpec((1, tile_m, hidden_p), lambda b, m, k: (0, m, 0)),  # pos emb
        ],
        out_specs=pl.BlockSpec((1, tile_m, hidden_p), lambda b, m, k: (b, m, 0)),
    )

    vmem_limit = int(min(budget, max(vmem_needed + (4 << 20), 16 << 20)))

    flops = 2 * B * np_padded * K_pad * hidden_p
    bytes_accessed = int(B * np_padded * K_pad * isz_c          # patches (read once)
                         + K_pad * hidden_p * isz_c             # weight (resident: once)
                         + np_padded * hidden_p * pos_isz       # pos emb
                         + B * hidden_p * 4                     # bias+time
                         + B * np_padded * hidden_p * 4)        # output

    out = pl.pallas_call(
        _make_kernel(tile_k, k_tiles, weight_resident),
        out_shape=jax.ShapeDtypeStruct((B, np_padded, hidden_p), jnp.float32),
        grid_spec=grid_spec,
        compiler_params=pltpu.CompilerParams(
            dimension_semantics=("parallel", "parallel", "arbitrary"),
            vmem_limit_bytes=vmem_limit,
        ),
        cost_estimate=pl.CostEstimate(flops=flops, transcendentals=0,
                                      bytes_accessed=bytes_accessed),
    )(patches, w_mat, add_vec, pos)

    embeddings = out[:, :n_patches, :hidden]
    features = None  # non-hybrid path
    return embeddings, features


def _reference(x, time, params, patch_size):
    """Pure-JAX reference of the same forward (for correctness check)."""
    x = x.astype(jnp.float32)
    B, C, D, H, W = x.shape
    pd, ph, pw = patch_size
    gd, gh, gw = D // pd, H // ph, W // pw
    n_patches = gd * gh * gw
    K = C * pd * ph * pw
    hidden = params["patch_w"].shape[0]

    patches = x.reshape(B, C, gd, pd, gh, ph, gw, pw)
    patches = patches.transpose(0, 2, 4, 6, 1, 3, 5, 7).reshape(B, n_patches, K)
    w_mat = params["patch_w"].reshape(hidden, K).T
    out = jnp.einsum("bnk,kh->bnh", patches, w_mat) + params["patch_b"][None, None, :]
    if not bool(np.any(np.asarray(time) == -1)):
        t = jnp.asarray(time, jnp.float32).reshape(B, 1, 1)
        out = out + (t * params["time_w"].reshape(1, 1, hidden)
                     + params["time_b"].reshape(1, 1, hidden))
    out = out + params["pos_emb"]
    return out


if __name__ == "__main__":
    # Small shapes consistent with the module: B=2, C=4, 16^3 volume,
    # patch_size=(4,4,4) -> n_patches=64, K=256, hidden=32 (exercises hidden->128 padding).
    B, C, D = 2, 4, 16
    patch_size = (4, 4, 4)
    hidden = 32
    n_patches = (D // patch_size[0]) ** 3

    key = jax.random.PRNGKey(0)
    kx, kt, kw, kb, ktw, ktb = jax.random.split(key, 6)

    x = jax.random.normal(kx, (B, C, D, D, D), dtype=jnp.float32)
    time = jax.random.uniform(kt, (B,), dtype=jnp.float32)  # no -1 -> time branch active

    params = {
        # Conv3d(in=C, out=hidden, kernel=patch, stride=patch)
        "patch_w": 0.02 * jax.random.normal(kw, (hidden, C) + patch_size, dtype=jnp.float32),
        "patch_b": 0.01 * jax.random.normal(kb, (hidden,), dtype=jnp.float32),
        # Conv1d(in=1, out=hidden, kernel=1)
        "time_w": 0.02 * jax.random.normal(ktw, (hidden, 1, 1), dtype=jnp.float32),
        "time_b": 0.01 * jax.random.normal(ktb, (hidden,), dtype=jnp.float32),
        # nn.Parameter(torch.zeros(1, n_patches, hidden)) -- zero init, as in __init__
        "pos_emb": jnp.zeros((1, n_patches, hidden), dtype=jnp.float32),
    }

    ref = _reference(x, time, params, patch_size)

    # f32 path: numerically faithful to the PyTorch module.
    emb, feats = embeddings3d_pallas(x, time, params, patch_size, use_bf16=False)
    emb = jax.block_until_ready(emb)
    np.testing.assert_allclose(np.asarray(emb), np.asarray(ref), rtol=1e-5, atol=1e-5)
    assert emb.shape == (B, n_patches, hidden)
    assert feats is None

    # bf16-operand path (MXU-native on v6e/v7x, halves patch/weight/pos HBM bytes).
    emb_bf16, _ = embeddings3d_pallas(x, time, params, patch_size, use_bf16=True)
    emb_bf16 = jax.block_until_ready(emb_bf16)
    np.testing.assert_allclose(np.asarray(emb_bf16), np.asarray(ref), rtol=3e-2, atol=3e-2)

    # "-1 in time" branch: time embedding skipped entirely (no zero tensors DMA'd).
    time_skip = jnp.array([-1.0, 0.5], dtype=jnp.float32)
    emb_nt, _ = embeddings3d_pallas(x, time_skip, params, patch_size)
    emb_nt = jax.block_until_ready(emb_nt)
    np.testing.assert_allclose(np.asarray(emb_nt),
                               np.asarray(_reference(x, time_skip, params, patch_size)),
                               rtol=1e-5, atol=1e-5)

    print("KERNEL_OK")
</pallas_src>

<mosaic_0001>
module attributes {stable_mosaic.version = 11 : i64} {
  func.func @kernel(%arg0: i32, %arg1: i32, %arg2: i32, %arg3: memref<1x64x256xf32, #tpu.memory_space<vmem>>, %arg4: memref<256x128xf32, #tpu.memory_space<vmem>>, %arg5: memref<1x1x128xf32, #tpu.memory_space<vmem>>, %arg6: memref<1x64x128xf32, #tpu.memory_space<vmem>>, %arg7: memref<1x64x128xf32, #tpu.memory_space<vmem>>) attributes {dimension_semantics = [#tpu.dimension_semantics<parallel>, #tpu.dimension_semantics<parallel>, #tpu.dimension_semantics<arbitrary>], iteration_bounds = array<i64: 2, 1, 1>, scalar_prefetch = 0 : i64, scratch_operands = 0 : i64, tpu.core_type = #tpu.core_type<tc>, window_params = [{transform_indices = @transform_0, window_bounds = array<i64: 1, 64, 256>}, {pipeline_mode = #tpu.pipeline_mode<synchronous>, transform_indices = @transform_1, window_bounds = array<i64: 256, 128>}, {transform_indices = @transform_2, window_bounds = array<i64: 1, 1, 128>}, {transform_indices = @transform_3, window_bounds = array<i64: 1, 64, 128>}, {transform_indices = @transform_4, window_bounds = array<i64: 1, 64, 128>}]} {
    %c0_i32 = arith.constant 0 : i32
    %0 = arith.cmpi eq, %arg2, %c0_i32 : i32
    %1 = arith.extui %0 : i1 to i32
    %c0_i32_0 = arith.constant 0 : i32
    %2 = arith.cmpi ne, %1, %c0_i32_0 : i32
    scf.if %2 {
      %cst_13 = arith.constant 0.000000e+00 : f32
      %16 = vector.broadcast %cst_13 : f32 to vector<1x64x128xf32>
      %c0_14 = arith.constant 0 : index
      %c0_15 = arith.constant 0 : index
      %c0_16 = arith.constant 0 : index
      %17 = vector.load %arg7[%c0_14, %c0_15, %c0_16] : memref<1x64x128xf32, #tpu.memory_space<vmem>>, vector<1x64x128xf32>
      tpu.vector_store %arg7[%c0_14, %c0_15, %c0_16], %16 {strides = array<i32>} : memref<1x64x128xf32, #tpu.memory_space<vmem>>, vector<1x64x128xf32>,
    } else {
    }
    %c0 = arith.constant 0 : index
    %c0_1 = arith.constant 0 : index
    %3 = vector.load %arg4[%c0, %c0_1] : memref<256x128xf32, #tpu.memory_space<vmem>>, vector<256x128xf32>
    %c0_2 = arith.constant 0 : index
    %c0_3 = arith.constant 0 : index
    %c0_4 = arith.constant 0 : index
    %4 = vector.load %arg7[%c0_2, %c0_3, %c0_4] : memref<1x64x128xf32, #tpu.memory_space<vmem>>, vector<1x64x128xf32>
    %5 = vector.shape_cast %4 : vector<1x64x128xf32> to vector<64x128xf32>
    %c0_5 = arith.constant 0 : index
    %c0_6 = arith.constant 0 : index
    %c0_7 = arith.constant 0 : index
    %6 = vector.load %arg3[%c0_5, %c0_6, %c0_7] : memref<1x64x256xf32, #tpu.memory_space<vmem>>, vector<1x64x256xf32>
    %7 = vector.shape_cast %6 : vector<1x64x256xf32> to vector<64x256xf32>
    %cst = arith.constant dense<0.000000e+00> : vector<64x128xf32>
    %8 = tpu.matmul %7, %3, %cst {dimension_numbers = #tpu.dot_dimension_numbers<[1], [0], [0], [1], [0, 0, 1, 1], [], []>} : vector<64x256xf32>, vector<256x128xf32>, vector<64x128xf32> -> vector<64x128xf32>
    %9 = arith.addf %5, %8 : vector<64x128xf32>
    %c0_8 = arith.constant 0 : index
    %c0_9 = arith.constant 0 : index
    %c0_10 = arith.constant 0 : index
    %10 = vector.load %arg7[%c0_8, %c0_9, %c0_10] : memref<1x64x128xf32, #tpu.memory_space<vmem>>, vector<1x64x128xf32>
    %11 = vector.shape_cast %10 : vector<1x64x128xf32> to vector<64x128xf32>
    %12 = vector.shape_cast %9 : vector<64x128xf32> to vector<1x64x128xf32>
    tpu.vector_store %arg7[%c0_8, %c0_9, %c0_10], %12 {strides = array<i32>} : memref<1x64x128xf32, #tpu.memory_space<vmem>>, vector<1x64x128xf32>,
    %c0_i32_11 = arith.constant 0 : i32
    %13 = arith.cmpi eq, %arg2, %c0_i32_11 : i32
    %14 = arith.extui %13 : i1 to i32
    %c0_i32_12 = arith.constant 0 : i32
    %15 = arith.cmpi ne, %14, %c0_i32_12 : i32
    scf.if %15 {
      %c0_13 = arith.constant 0 : index
      %c0_14 = arith.constant 0 : index
      %c0_15 = arith.constant 0 : index
      %16 = vector.load %arg7[%c0_13, %c0_14, %c0_15] : memref<1x64x128xf32, #tpu.memory_space<vmem>>, vector<1x64x128xf32>
      %17 = vector.shape_cast %16 : vector<1x64x128xf32> to vector<64x128xf32>
      %c0_16 = arith.constant 0 : index
      %c0_17 = arith.constant 0 : index
      %c0_18 = arith.constant 0 : index
      %18 = vector.load %arg5[%c0_16, %c0_17, %c0_18] : memref<1x1x128xf32, #tpu.memory_space<vmem>>, vector<1x1x128xf32>
      %19 = vector.shape_cast %18 : vector<1x1x128xf32> to vector<1x128xf32>
      %20 = vector.broadcast %19 : vector<1x128xf32> to vector<64x128xf32>
      %21 = arith.addf %17, %20 : vector<64x128xf32>
      %c0_19 = arith.constant 0 : index
      %c0_20 = arith.constant 0 : index
      %c0_21 = arith.constant 0 : index
      %22 = vector.load %arg6[%c0_19, %c0_20, %c0_21] : memref<1x64x128xf32, #tpu.memory_space<vmem>>, vector<1x64x128xf32>
      %23 = vector.shape_cast %22 : vector<1x64x128xf32> to vector<64x128xf32>
      %24 = arith.addf %21, %23 : vector<64x128xf32>
      %c0_22 = arith.constant 0 : index
      %c0_23 = arith.constant 0 : index
      %c0_24 = arith.constant 0 : index
      %25 = vector.load %arg7[%c0_22, %c0_23, %c0_24] : memref<1x64x128xf32, #tpu.memory_space<vmem>>, vector<1x64x128xf32>
      %26 = vector.shape_cast %25 : vector<1x64x128xf32> to vector<64x128xf32>
      %27 = vector.shape_cast %24 : vector<64x128xf32> to vector<1x64x128xf32>
      tpu.vector_store %arg7[%c0_22, %c0_23, %c0_24], %27 {strides = array<i32>} : memref<1x64x128xf32, #tpu.memory_space<vmem>>, vector<1x64x128xf32>,
    } else {
    }
    return
  }
  func.func @transform_0(%arg0: i32, %arg1: i32, %arg2: i32) -> (i32, i32, i32) {
    %c0_i32 = arith.constant 0 : i32
    return %arg0, %arg1, %arg2 : i32, i32, i32
  }
  func.func @transform_1(%arg0: i32, %arg1: i32, %arg2: i32) -> (i32, i32) {
    %c0_i32 = arith.constant 0 : i32
    %c0_i32_0 = arith.constant 0 : i32
    %c0_i32_1 = arith.constant 0 : i32
    return %c0_i32, %c0_i32_0 : i32, i32
  }
  func.func @transform_2(%arg0: i32, %arg1: i32, %arg2: i32) -> (i32, i32, i32) {
    %c0_i32 = arith.constant 0 : i32
    %c0_i32_0 = arith.constant 0 : i32
    %c0_i32_1 = arith.constant 0 : i32
    return %arg0, %c0_i32, %c0_i32_0 : i32, i32, i32
  }
  func.func @transform_3(%arg0: i32, %arg1: i32, %arg2: i32) -> (i32, i32, i32) {
    %c0_i32 = arith.constant 0 : i32
    %c0_i32_0 = arith.constant 0 : i32
    %c0_i32_1 = arith.constant 0 : i32
    return %c0_i32, %arg1, %c0_i32_0 : i32, i32, i32
  }
  func.func @transform_4(%arg0: i32, %arg1: i32, %arg2: i32) -> (i32, i32, i32) {
    %c0_i32 = arith.constant 0 : i32
    %c0_i32_0 = arith.constant 0 : i32
    return %arg0, %arg1, %c0_i32 : i32, i32, i32
  }
}

</mosaic_0001>

<bundles_post_ra>
// kernel: tpu_custom_call.1
= control target key start
LH: loop header
LB: loop body
LE: loop exit
PB: predicated region body
PF: predicated region fallthrough
CT: control target
= control target key end

     0   :  { %9 = vsyncpa [#allocation3], 0  ;;  %s1302_s0 = inlined_call_operand.hbm [shape: f32[2,64,256], index: 0, kind: input, shape index: {}]   ;;  %s1303_s1 = inlined_call_operand.hbm [shape: f32[256,128], index: 1, kind: input, shape index: {}]   ;;  %s1304_s2 = inlined_call_operand.vmem [shape: f32[2,1,128], index: 2, kind: input, shape index: {}]   ;;  %s1305_s3 = inlined_call_operand.hbm [shape: f32[1,64,128], index: 3, kind: input, shape index: {}]   ;;  %s1306_s4 = inlined_call_operand.hbm [shape: f32[2,64,128], index: 4, kind: output, shape index: {}]  }
   0x1   :  { %11 = vsyncpa [#allocation3 + $0x1], 0 }
   0x2   :  { %12 = vsyncpa [#allocation6], 0 }
   0x3   :  { %13 = vsyncpa [#allocation4], 0 }
   0x4   :  { %15 = vsyncpa [#allocation4 + $0x1], 0  ;;  %s1079_s15 = smov 0   ;;  %s1081_s16 = smov 0  }
   0x5   :  { %s1083_s17 = smov 0   ;;  %s1085_s18 = smov 0  }
   0x6   :  { %s1087_s19 = smov 0   ;;  %s1089_s20 = smov 0  }
   0x7 LB: > { %s678_s21 = sadd.s32 4294967295, %s1042_s20   ;;  %s679_s22 = sadd.s32 4294967294, %s1042_s20   ;;  %s1042_s20 = sphi %s1089_s20, %s21_s20   ;;  %s1038_s19 = sphi %s1087_s19, %s1326_s19   ;;  %s1034_s18 = sphi %s1085_s18, %s1325_s18   ;;  %s1030_s17 = sphi %s1083_s17, %s1324_s17   ;;  %s1026_s16 = sphi %s1081_s16, %s1323_s16   ;;  %s1022_s15 = sphi %s1079_s15, %s1322_s15  }
   0x8   : > { %p64_p0 = scmp.ne.s32.totalorder %s1026_s16, %s1022_s15  ;;  %p1113_p1 = scmp.eq.s32.totalorder %s678_s21, 0 }
   0x9   : > { %p1117_p2 = scmp.eq.s32.totalorder %s678_s21, 1  ;;  %p169_p3 = scmp.eq.s32.totalorder %s679_s22, 1 }
   0xa   : > { %s1310_s23 = scalar_select %p1113_p1, 1, 0 }
   0xb   : > { %p1123_p4 = por %p1113_p1, %p64_p0  ;;  %p680_p5 = scmp.ge.s32.totalorder %s1042_s20, 1 }
   0xc   : > { %p1128_p6 = por %p169_p3, %p64_p0  ;;  %p176_p7 = scmp.lt.s32.totalorder %s1042_s20, 3 }
   0xd   : > { %s1312_s25 = scalar_select %p1123_p4, 1, 0 }
   0xe   : > { %s1313_s26 = scalar_select %p1128_p6, 1, 0 }
   0xf   : > { %p1133_p8 = pnand %p680_p5, %p176_p7  ;;  %s1044_s28 = smov [#allocation5]  }
  0x10   : > { %s188_s29 = sshll.u32 %s1044_s28, 4  ;;  %s1045_s5 = smov [#allocation7]   ;;  %s189_s29 = int_to_ptr.vmem [resolvable:$true] %s188_s29 }
  0x11   : > { %p800_p9 = pneg %p1133_p8  ;;  %s204_s6 = sshll.u32 %s1045_s5, 4  ;;  %s205_s6 = int_to_ptr.vmem [resolvable:$true] %s204_s6 }
  0x12   : > { %s889_s7 = scalar_lea.vmem %s189_s29, 4096  ;;  %p897_p5 = scmp.lt.s32.totalorder %s189_s29, %s189_s29 }
  0x13   : > { %p1142_p11 = pnand %p800_p9, %p1113_p1  ;;  %p890_p13 = scmp.ne.s32.totalorder %s189_s29, %s889_s7 }
  0x14   : > { %p898_p7 = scmp.lt.s32.totalorder %s889_s7, %s889_s7 }
  0x15   : > { %p880_p12 = pneg %p1142_p11 }
  0x16   : > { %p899_p10 = por %p898_p7, %p897_p5 }
  0x17   : > { %p892_p0 = pnand %p890_p13, %p880_p12 }
  0x19   : > { %p893_p3 = pneg %p892_p0 }
  0x1b   : > { %p900_p9 = pnand %p899_p10, %p893_p3 }
  0x1d   : > { %903 = shalt.err (!%p900_p9)
}
  0x1e   : > { %s1046_s8 = smov 128   ;;  %s1047_s9 = smov 8  }
  0x1f   : > { %803 = dma.hbm_to_vmem [thread:$0]  (!%p1142_p11), %s1303_s1, 4096, %s189_s29, [#allocation6], %s1046_s8, %s1046_s8, %s1047_s9  }
  0x20   : > { %s915_s12 = scalar_lea.vmem %s205_s6, 1024  ;;  %p923_p1 = scmp.lt.s32.totalorder %s205_s6, %s205_s6 }
  0x21   : > { %p916_p6 = scmp.ne.s32.totalorder %s205_s6, %s915_s12  ;;  %p924_p4 = scmp.lt.s32.totalorder %s915_s12, %s915_s12 }
  0x23   : > { %p918_p13 = pnand %p916_p6, %p880_p12  ;;  %p925_p5 = por %p924_p4, %p923_p1 }
  0x25   : > { %p919_p0 = pneg %p918_p13 }
  0x27   : > { %p926_p10 = pnand %p925_p5, %p919_p0 }
  0x29   : > { %929 = shalt.err (!%p926_p10)
}
  0x2a   : > { %806 = dma.hbm_to_vmem [thread:$0]  (!%p1142_p11), %s1305_s3, 1024, %s205_s6, [#allocation6], %s1046_s8, %s1046_s8, %s1047_s9  }
  0x2b   : > { %s40_s21 = sadd.s32 1, %s1038_s19  ;;  %s51_s22 = sadd.s32 1, %s1030_s17 }
  0x2c   : > { %p42_p1 = scmp.ge.s32.totalorder %s40_s21, 2  ;;  %p58_p4 = scmp.ne.s32.totalorder %s1030_s17, %s1026_s16 }
  0x2d   : > { %p59_p6 = scmp.eq.s32.totalorder %s1042_s20, 0  ;;  %p817_p12 = scmp.lt.s32.totalorder %s1042_s20, 2 }
  0x2e   : > { %s1328_s21 = smov (%p42_p1, %s40_s21), 0  ;;  %p1174_p7 = por %p1117_p2, %p58_p4 }
  0x2f   : > { %p60_p3 = por %p59_p6, %p58_p4  ;;  %s44_s29 = ssub.s32 %s1038_s19, %s1328_s21 }
  0x30   : > { %s218_s30 = sand.u32 1, %s1030_s17   ;;  %p49_p9 = scmp.eq.s32.totalorder %s44_s29, 0 }
  0x31   : > { %s684_s5 = sshll.u32 %s218_s30, 7  ;;  %s698_s6 = sshll.u32 %s1038_s19, 11 }
  0x32   : > { %s1183_s7 = scalar_select %p49_p9, %s1030_s17, %s51_s22  }
  0x33   : > { %s233_s10 = scalar_lea.hbm %s1302_s0, %s698_s6  ;;  %s222_s11 = scalar_lea.vmem [#allocation2], %s684_s5 }
  0x34   : > { %s234_s12 = sshll.u32 %s222_s11, 4  ;;  %p1190_p11 = pnand %p817_p12, %p60_p3  ;;  %s235_s12 = int_to_ptr.vmem [resolvable:$true] %s234_s12 }
  0x35   : > { %s219_s13 = scalar_lea.sflag [#allocation3], %s218_s30  ;;  %s943_s14 = scalar_lea.vmem %s235_s12, 2048 }
  0x36   : > { %p932_p2 = pneg %p1190_p11  ;;  %p944_p13 = scmp.ne.s32.totalorder %s235_s12, %s943_s14 }
  0x37   : > { %s1048_s22 = smov [#allocation2]  }
  0x38   : > { %p946_p0 = pnand %p944_p13, %p932_p2  ;;  %s948_s29 = sshll.u32 %s1048_s22, 4  ;;  %s949_s29 = int_to_ptr.vmem [resolvable:$false] %s948_s29 }
  0x39   : > { %s950_s6 = scalar_lea.vmem %s949_s29, 4096  ;;  %p951_p10 = scmp.lt.s32.totalorder %s235_s12, %s949_s29 }
  0x3a   : > { %p947_p5 = pneg %p946_p0  ;;  %p952_p1 = scmp.lt.s32.totalorder %s950_s6, %s943_s14 }
  0x3c   : > { %p953_p4 = por %p952_p1, %p951_p10 }
  0x3e   : > { %p954_p6 = pnand %p953_p4, %p947_p5 }
  0x40   : > { %957 = shalt.err (!%p954_p6)
}
  0x41   : > { %s1049_s5 = smov 256   ;;  %s1050_s8 = smov 16  }
  0x42   : > { %810 = dma.hbm_to_vmem [thread:$0]  (!%p1190_p11), %s233_s10, 2048, %s235_s12, %s219_s13, %s1049_s5, %s1049_s5, %s1050_s8  }
  0x43   : > { %252 = sbr.rel (%p1133_p8) target bundleno = 337 (0x151), region = 36  ;;  %s1201_s30 = sand.u32 (!%p1133_p8), 1, %s1026_s16  }
  0x44   : > { %s688_s9 = sshll.u32 (!%p1133_p8), %s1201_s30, 7  ;;  %s255_s11 = scalar_lea.sflag (!%p1133_p8), [#allocation3], %s1201_s30 }
  0x45   : > { %s1205_s14 = scalar_lea.vmem (!%p1133_p8), [#allocation2], %s688_s9  ;;  %p1318_p12 = scmp.ne.s32.totalorder (!%p1133_p8), %s1312_s25, 0 }
  0x48   : > { %1009 = dma.done.wait (%p1318_p12), %s255_s11, 2048  }
  0x49   : > { %1011 = vsyncadd (%p1318_p12), %s255_s11, 4294965248  ;;  %p1319_p3 = scmp.ne.s32.totalorder %s1310_s23, 0 }
  0x4b   : > { %1013 = dma.done.wait (%p1319_p3), [#allocation6], 5120  }
  0x4c   : > { %1015 = vsyncadd (%p1319_p3), [#allocation6], 4294962176  ;;  %v344_v0 = vld [vmem:[#allocation5 + $0xf8] sm:$0xff]  ;;  %v343_v2 = vld [vmem:[#allocation5 + $0xf0] sm:$0xff]  ;;  %p296_p8 = scmp.lt.s32.totalorder %s1034_s18, 1  ;;  %s691_s12 = sshll.u32 %s1201_s30, 6 }
  0x4d   : > { %v328_v1 = vld [vmem:[#allocation5 + $0x78] sm:$0xff]  ;;  %700 = vmatprep.subr.mxu0 %v344_v0  ;;  %756 = vmatprep.subr.mxu1 %v344_v0  ;;  %v327_v3 = vld [vmem:[#allocation5 + $0x70] sm:$0xff]  ;;  %v342_v4 = vld [vmem:[#allocation5 + $0xe8] sm:$0xff]  ;;  %s1237_s24 = scalar_lea.vmem [#allocation8], %s691_s12  ;;  %s699_s13 = sshll.u32 %s1034_s18, 10 }
  0x4e   : > { %701 = vmatpush3.msra.mxu0 %v328_v1  ;;  %772 = vmatpush3.msra.mxu1 %v328_v1  ;;  %v326_v5 = vld [vmem:[#allocation5 + $0x68] sm:$0xff]  ;;  %v341_v6 = vld [vmem:[#allocation5 + $0xe0] sm:$0xff]  ;;  %v340_v8 = vld [vmem:[#allocation5 + $0xd8] sm:$0xff]  ;;  %s297_s23 = scalar_select %p296_p8, %s1034_s18, 1 }
  0x4f   : > { %702 = vmatprep.subr.mxu0 %v343_v2  ;;  %757 = vmatprep.subr.mxu1 %v343_v2  ;;  %v325_v7 = vld [vmem:[#allocation5 + $0x60] sm:$0xff]  ;;  %v324_v9 = vld [vmem:[#allocation5 + $0x58] sm:$0xff]  ;;  %v339_v10 = vld [vmem:[#allocation5 + $0xd0] sm:$0xff]  ;;  %s556_s22 = sshll.u32 %s1237_s24, 4  ;;  %s1250_s5 = scalar_lea.hbm %s1306_s4, %s699_s13  ;;  %s1252_s22 = int_to_ptr.vmem [resolvable:$true] %s556_s22 }
  0x50   : > { %703 = vmatpush3.msra.mxu0 %v327_v3  ;;  %773 = vmatpush3.msra.mxu1 %v327_v3  ;;  %v323_v11 = vld [vmem:[#allocation5 + $0x50] sm:$0xff]  ;;  %v338_v12 = vld [vmem:[#allocation5 + $0xc8] sm:$0xff]  ;;  %v337_v14 = vld [vmem:[#allocation5 + $0xc0] sm:$0xff]  ;;  %s298_s10 = scalar_lea.vmem %s1304_s2, %s297_s23  ;;  %s541_s18 = scalar_lea.sflag [#allocation4], %s1201_s30 }
  0x51   : > { %704 = vmatprep.subr.mxu0 %v342_v4  ;;  %758 = vmatprep.subr.mxu1 %v342_v4  ;;  %v322_v13 = vld [vmem:[#allocation5 + $0x48] sm:$0xff]  ;;  %v321_v15 = vld [vmem:[#allocation5 + $0x40] sm:$0xff]  ;;  %v336_v16 = vld [vmem:[#allocation5 + $0xb8] sm:$0xff]  ;;  %s958_s8 = scalar_lea.vmem %s1252_s22, 1024  ;;  %s1051_s9 = smov [#allocation8]  }
  0x52   : > { %705 = vmatpush3.msra.mxu0 %v326_v5  ;;  %774 = vmatpush3.msra.mxu1 %v326_v5  ;;  %v320_v17 = vld [vmem:[#allocation5 + $0x38] sm:$0xff]  ;;  %v335_v18 = vld [vmem:[#allocation5 + $0xb0] sm:$0xff]  ;;  %v334_v20 = vld [vmem:[#allocation5 + $0xa8] sm:$0xff]  ;;  %p959_p9 = scmp.ne.s32.totalorder %s1252_s22, %s958_s8  ;;  %s962_s11 = sshll.u32 %s1051_s9, 4  ;;  %s963_s11 = int_to_ptr.vmem [resolvable:$false] %s962_s11 }
  0x53   : > { %706 = vmatprep.subr.mxu0 %v341_v6  ;;  %759 = vmatprep.subr.mxu1 %v341_v6  ;;  %v319_v19 = vld [vmem:[#allocation5 + $0x30] sm:$0xff]  ;;  %v318_v21 = vld [vmem:[#allocation5 + $0x28] sm:$0xff]  ;;  %v333_v22 = vld [vmem:[#allocation5 + $0xa0] sm:$0xff]  ;;  %p965_p13 = scmp.lt.s32.totalorder %s1252_s22, %s963_s11 }
  0x54   : > { %707 = vmatpush3.msra.mxu0 %v325_v7  ;;  %775 = vmatpush3.msra.mxu1 %v325_v7  ;;  %v317_v23 = vld [vmem:[#allocation5 + $0x20] sm:$0xff]  ;;  %v332_v24 = vld [vmem:[#allocation5 + $0x98] sm:$0xff]  ;;  %v331_v26 = vld [vmem:[#allocation5 + $0x90] sm:$0xff]  ;;  %p960_p11 = pnand %p959_p9, %p1174_p7 }
  0x55   : > { %708 = vmatprep.subr.mxu0 %v340_v8  ;;  %760 = vmatprep.subr.mxu1 %v340_v8  ;;  %v316_v25 = vld [vmem:[#allocation5 + $0x18] sm:$0xff]  ;;  %v315_v27 = vld [vmem:[#allocation5 + $0x10] sm:$0xff]  ;;  %v330_v28 = vld [vmem:[#allocation5 + $0x88] sm:$0xff] }
  0x56   : > { %709 = vmatpush3.msra.mxu0 %v324_v9  ;;  %776 = vmatpush3.msra.mxu1 %v324_v9  ;;  %v314_v29 = vld [vmem:[#allocation5 + $0x8] sm:$0xff]  ;;  %v329_v30 = vld [vmem:[#allocation5 + $0x80] sm:$0xff]  ;;  %v356_v36 = vld [vmem:[%s1205_s14 + $0x18] sm:$0xff]  ;;  %p961_p2 = pneg %p960_p11 }
  0x57   : > { %710 = vmatprep.subr.mxu0 %v339_v10  ;;  %761 = vmatprep.subr.mxu1 %v339_v10  ;;  %v313_v31 = vld [vmem:[#allocation5] sm:$0xff]  ;;  %v354_v32 = vld [vmem:[%s1205_s14 + $0x8] sm:$0xff]  ;;  %v364_v37 = vld [vmem:[%s1205_s14 + $0x58] sm:$0xff] }
  0x58   : > { %711 = vmatpush3.msra.mxu0 %v323_v11  ;;  %777 = vmatpush3.msra.mxu1 %v323_v11  ;;  %v362_v33 = vld [vmem:[%s1205_s14 + $0x48] sm:$0xff]  ;;  %v353_v34 = vld [vmem:[%s1205_s14] sm:$0xff]  ;;  %v355_v38 = vld [vmem:[%s1205_s14 + $0x10] sm:$0xff] }
  0x59   : > { %712 = vmatprep.subr.mxu0 %v338_v12  ;;  %762 = vmatprep.subr.mxu1 %v338_v12  ;;  %v361_v35 = vld [vmem:[%s1205_s14 + $0x40] sm:$0xff]  ;;  %v363_v39 = vld [vmem:[%s1205_s14 + $0x50] sm:$0xff]  ;;  %v358_v40 = vld [vmem:[%s1205_s14 + $0x28] sm:$0xff] }
  0x5a   : > { %713 = vmatpush3.msra.mxu0 %v322_v13  ;;  %778 = vmatpush3.msra.mxu1 %v322_v13  ;;  %v366_v41 = vld [vmem:[%s1205_s14 + $0x68] sm:$0xff]  ;;  %v357_v42 = vld [vmem:[%s1205_s14 + $0x20] sm:$0xff]  ;;  %v360_v44 = vld [vmem:[%s1205_s14 + $0x38] sm:$0xff] }
  0x5b   : > { %714 = vmatprep.subr.mxu0 %v337_v14  ;;  %763 = vmatprep.subr.mxu1 %v337_v14  ;;  %v365_v43 = vld [vmem:[%s1205_s14 + $0x60] sm:$0xff]  ;;  %v368_v45 = vld [vmem:[%s1205_s14 + $0x78] sm:$0xff]  ;;  %v359_v46 = vld [vmem:[%s1205_s14 + $0x30] sm:$0xff] }
  0x5c   : > { %715 = vmatpush3.msra.mxu0 %v321_v15  ;;  %779 = vmatpush3.msra.mxu1 %v321_v15  ;;  %v367_v47 = vld [vmem:[%s1205_s14 + $0x70] sm:$0xff]  ;;  %v692_v54 = vld [vmem:[%s298_s10] ss:$0 sm:$0xff]  ;;  %v517_v5 = vld [vmem:[#allocation7 + $0x8] sm:$0xff]  ;;  %s964_s14 = scalar_lea.vmem %s963_s11, 2048 }
  0x5d   : > { %716 = vmatprep.subr.mxu0 %v336_v16  ;;  %764 = vmatprep.subr.mxu1 %v336_v16  ;;  %v516_v57 = vld [vmem:[#allocation7] sm:$0xff]  ;;  %v521_v6 = vld [vmem:[#allocation7 + $0x28] sm:$0xff]  ;;  %p966_p0 = scmp.lt.s32.totalorder %s964_s14, %s958_s8 }
  0x5e   : > { %717 = vmatpush3.msra.mxu0 %v320_v17  ;;  %780 = vmatpush3.msra.mxu1 %v320_v17  ;;  %v520_v58 = vld [vmem:[#allocation7 + $0x20] sm:$0xff]  ;;  %v518_v17 = vld [vmem:[#allocation7 + $0x10] sm:$0xff] }
  0x5f   : > { %718 = vmatprep.subr.mxu0 %v335_v18  ;;  %765 = vmatprep.subr.mxu1 %v335_v18  ;;  %v522_v18 = vld [vmem:[#allocation7 + $0x30] sm:$0xff]  ;;  %p967_p5 = por %p966_p0, %p965_p13 }
  0x60   : > { %719 = vmatpush3.msra.mxu0 %v319_v19  ;;  %781 = vmatpush3.msra.mxu1 %v319_v19 }
  0x61   : > { %720 = vmatprep.subr.mxu0 %v334_v20  ;;  %766 = vmatprep.subr.mxu1 %v334_v20  ;;  %p968_p10 = pnand %p967_p5, %p961_p2 }
  0x62   : > { %721 = vmatpush3.msra.mxu0 %v318_v21  ;;  %782 = vmatpush3.msra.mxu1 %v318_v21 }
  0x63   : > { %722 = vmatprep.subr.mxu0 %v333_v22  ;;  %767 = vmatprep.subr.mxu1 %v333_v22 }
  0x64   : > { %723 = vmatpush3.msra.mxu0 %v317_v23  ;;  %783 = vmatpush3.msra.mxu1 %v317_v23 }
  0x65   : > { %724 = vmatprep.subr.mxu0 %v332_v24  ;;  %768 = vmatprep.subr.mxu1 %v332_v24 }
  0x66   : > { %725 = vmatpush3.msra.mxu0 %v316_v25  ;;  %784 = vmatpush3.msra.mxu1 %v316_v25 }
  0x67   : > { %726 = vmatprep.subr.mxu0 %v331_v26  ;;  %769 = vmatprep.subr.mxu1 %v331_v26 }
  0x68   : > { %727 = vmatpush3.msra.mxu0 %v315_v27  ;;  %785 = vmatpush3.msra.mxu1 %v315_v27  ;;  %v519_v27 = vld [vmem:[#allocation7 + $0x18] sm:$0xff] }
  0x69   : > { %728 = vmatprep.subr.mxu0 %v330_v28  ;;  %770 = vmatprep.subr.mxu1 %v330_v28  ;;  %v523_v28 = vld [vmem:[#allocation7 + $0x38] sm:$0xff] }
  0x6a   : > { %729 = vmatpush3.msra.mxu0 %v314_v29  ;;  %786 = vmatpush3.msra.mxu1 %v314_v29 }
  0x6b   : > { %730 = vmatprep.subr.mxu0 %v329_v30  ;;  %771 = vmatprep.subr.mxu1 %v329_v30 }
  0x6c   : > { %731 = vmatpush3.msra.mxu0 %v313_v31  ;;  %787 = vmatpush3.msra.mxu1 %v313_v31 }
  0x6d   : > { %433 = vmatprep.mubr.f32.mxu0 %v354_v32  ;;  %453 = vmatprep.mubr.f32.mxu1 %v362_v33 }
  0x6e   : > { %434 = vmatmul.mubr.f32.vlgmr.msra.gmra.mxu0 %v353_v34  ;;  %454 = vmatmul.mubr.f32.vlgmr.msra.gmra.mxu1 %v361_v35 }
  0x6f   : > { %438 = vmatprep.mubr.f32.mxu0 %v356_v36  ;;  %458 = vmatprep.mubr.f32.mxu1 %v364_v37 }
  0x72   : > { %439 = vmatmul.mubr.f32.gmra.mxu0 %v355_v38  ;;  %459 = vmatmul.mubr.f32.gmra.mxu1 %v363_v39 }
  0x73   : > { %443 = vmatprep.mubr.f32.mxu0 %v358_v40  ;;  %463 = vmatprep.mubr.f32.mxu1 %v366_v41 }
  0x76   : > { %444 = vmatmul.mubr.f32.gmra.mxu0 %v357_v42  ;;  %464 = vmatmul.mubr.f32.gmra.mxu1 %v365_v43 }
  0x77   : > { %448 = vmatprep.mubr.f32.mxu0 %v360_v44  ;;  %468 = vmatprep.mubr.f32.mxu1 %v368_v45 }
  0x7a   : > { %449 = vmatmul.mubr.f32.gmra.mxu0 %v359_v46  ;;  %469 = vmatmul.mubr.f32.gmra.mxu1 %v367_v47 }
 0x12e   : > { %v732_v48 = vpop.f32.mrf.mxu0  ;;  %v744_v49 = vpop.f32.mrf.mxu1 }
 0x130   : > { %v733_v50 = vpop.f32.mrf.mxu0  ;;  %v745_v51 = vpop.f32.mrf.mxu1 }
 0x131   : > { %v734_v52 = vadd.f32 %v733_v50, %v732_v48  ;;  %v746_v53 = vadd.f32 %v745_v51, %v744_v49 }
 0x132   : > { %v735_v55 = vpop.f32.mrf.mxu0  ;;  %v747_v56 = vpop.f32.mrf.mxu1 }
 0x133   : > { %v508_v61 = vadd.f32 %v734_v52, %v692_v54  ;;  %v512_v62 = vadd.f32 %v746_v53, %v692_v54 }
 0x134   : > { %v736_v59 = vpop.f32.mrf.mxu0  ;;  %v748_v60 = vpop.f32.mrf.mxu1 }
 0x135   : > { %v737_v63 = vadd.f32 %v736_v59, %v735_v55  ;;  %v749_v0 = vadd.f32 %v748_v60, %v747_v56  ;;  %v524_v3 = vadd.f32 %v516_v57, %v508_v61  ;;  %v528_v4 = vadd.f32 %v520_v58, %v512_v62 }
 0x136   : > { %v738_v1 = vpop.f32.mrf.mxu0  ;;  %v750_v2 = vpop.f32.mrf.mxu1 }
 0x137   : > { %532 = vst [vmem:[%s1237_s24] sm:$0xff] %v524_v3  ;;  %536 = vst [vmem:[%s1237_s24 + $0x20] sm:$0xff] %v528_v4  ;;  %v509_v9 = vadd.f32 %v737_v63, %v692_v54  ;;  %v513_v10 = vadd.f32 %v749_v0, %v692_v54 }
 0x138   : > { %v739_v7 = vpop.f32.mrf.mxu0  ;;  %v751_v8 = vpop.f32.mrf.mxu1 }
 0x139   : > { %v740_v11 = vadd.f32 %v739_v7, %v738_v1  ;;  %v752_v12 = vadd.f32 %v751_v8, %v750_v2  ;;  %v525_v15 = vadd.f32 %v517_v5, %v509_v9  ;;  %v529_v16 = vadd.f32 %v521_v6, %v513_v10 }
 0x13a   : > { %v741_v13 = vpop.f32.mrf.mxu0  ;;  %v753_v14 = vpop.f32.mrf.mxu1 }
 0x13b   : > { %533 = vst [vmem:[%s1237_s24 + $0x8] sm:$0xff] %v525_v15  ;;  %537 = vst [vmem:[%s1237_s24 + $0x28] sm:$0xff] %v529_v16  ;;  %v510_v21 = vadd.f32 %v740_v11, %v692_v54  ;;  %v514_v22 = vadd.f32 %v752_v12, %v692_v54 }
 0x13c   : > { %v742_v19 = vpop.f32.mrf.mxu0  ;;  %v754_v20 = vpop.f32.mrf.mxu1 }
 0x13d   : > { %v743_v23 = vadd.f32 %v742_v19, %v741_v13  ;;  %v755_v24 = vadd.f32 %v754_v20, %v753_v14  ;;  %v526_v25 = vadd.f32 %v518_v17, %v510_v21  ;;  %v530_v26 = vadd.f32 %v522_v18, %v514_v22 }
 0x13f   : > { %534 = vst [vmem:[%s1237_s24 + $0x10] sm:$0xff] %v526_v25  ;;  %538 = vst [vmem:[%s1237_s24 + $0x30] sm:$0xff] %v530_v26  ;;  %v511_v29 = vadd.f32 %v743_v23, %v692_v54  ;;  %v515_v30 = vadd.f32 %v755_v24, %v692_v54 }
 0x141   : > { %v527_v31 = vadd.f32 %v519_v27, %v511_v29  ;;  %v531_v32 = vadd.f32 %v523_v28, %v515_v30 }
 0x143   : > { %535 = vst [vmem:[%s1237_s24 + $0x18] sm:$0xff] %v527_v31  ;;  %539 = vst [vmem:[%s1237_s24 + $0x38] sm:$0xff] %v531_v32 }
 0x144   : > { %971 = shalt.err (!%p968_p10)
}
 0x145   : > { %s972_s23 = scalar_lea.hbm %s1250_s5, 1024  ;;  %s976_s10 = scalar_lea.hbm %s1306_s4, 2048 }
 0x146   : > { %p973_p1 = scmp.ne.s32.totalorder %s1250_s5, %s972_s23  ;;  %p977_p12 = scmp.lt.s32.totalorder %s1250_s5, %s1306_s4 }
 0x147   : > { %p978_p3 = scmp.lt.s32.totalorder %s976_s10, %s972_s23 }
 0x148   : > { %p974_p4 = pnand %p973_p1, %p1174_p7 }
 0x149   : > { %p979_p8 = por %p978_p3, %p977_p12 }
 0x14a   : > { %p975_p6 = pneg %p974_p4 }
 0x14c   : > { %p980_p9 = pnand %p979_p8, %p975_p6 }
 0x14e   : > { %983 = shalt.err (!%p980_p9)
}
 0x14f   : > { %s1052_s13 = smov 128   ;;  %s1053_s29 = smov 8  }
 0x150   : > { %798 = dma.vmem_to_hbm [thread:$0]  (%p1174_p7), %s1252_s22, 1024, %s1250_s5, %s541_s18, %s1052_s13, %s1052_s13, %s1053_s29  }
 0x151 PF: > { %s571_s6 = sand.u32 1, %s1022_s15   ;;  %p1320_p11 = scmp.ne.s32.totalorder %s1313_s26, 0 }
 0x152   : > { %p1321_p2 = scmp.ge.s32.totalorder %s1042_s20, 2  ;;  %s572_s8 = scalar_lea.sflag [#allocation4], %s571_s6 }
 0x154   : > { %p812_p13 = pnand %p1321_p2, %p1320_p11 }
 0x156   : > { %p813_p0 = pneg %p812_p13 }
 0x158   : > { %1017 = dma.done.wait (%p813_p0), %s572_s8, 1024  }
 0x159   : > { %1019 = vsyncadd (%p813_p0), %s572_s8, 4294966272  ;;  %s21_s20 = sadd.s32 1, %s1042_s20   ;;  %s1322_s15 = smov %s1026_s16 }
 0x15a   : > { %p18_p5 = scmp.ge.s32.totalorder %s21_s20, 4   ;;  %s1323_s16 = smov %s1030_s17 }
 0x15b   : > { %s1324_s17 = smov %s1183_s7  ;;  %s1325_s18 = smov %s1038_s19 }
 0x15c   : > { %s1326_s19 = smov %s1328_s21  ;;  %20 = sbr.rel (!%p18_p5) target bundleno = 7 (0x7), region = 101 }
 0x161   :  { %577 = vsyncpa [#allocation3], 1 }
 0x162   :  { %579 = vsyncpa [#allocation3 + $0x1], 1 }
 0x163   :  { %580 = vsyncpa [#allocation6], 1 }
 0x164   :  { %581 = vsyncpa [#allocation4], 1 }
 0x165   :  { %583 = vsyncpa [#allocation4 + $0x1], 1 }

</bundles_post_ra>
